<compile_context>
chip_gen: v5e
topology: v5e:2x2
jax: 0.10.0
libtpu: 0.0.40
codegen_flags: <defaults>
</compile_context>

<pallas_src>
import math
import jax
import jax.numpy as jnp
from jax import lax
from jax.experimental import pallas as pl
from jax.experimental.pallas import tpu as pltpu

SEG = 128  # per-projection lane segment (one full vreg of lanes)


def _mha_kernel(num_heads, head_dim, seg, scale):
    H = num_heads

    def kernel(x_ref, wqkv_ref, bqkv_ref, wout_ref, bout_ref, out_ref):
        x = x_ref[...].astype(jnp.bfloat16)                      # (T, E)
        T, E = x.shape
        x3 = jnp.broadcast_to(x[None, :, :], (H, T, E))          # (H, T, E)

        # --- fused per-head QKV projection: one batched MXU contraction ---
        # weight layout per head: [ q | k | v ], each padded to SEG lanes (zeros)
        qkv = lax.dot_general(
            x3, wqkv_ref[...],
            dimension_numbers=(((2,), (1,)), ((0,), (0,))),
            preferred_element_type=jnp.float32) + bqkv_ref[...]   # (H, T, 3*SEG) f32

        # lane-aligned, full-vreg-width slices (padding lanes are exactly zero)
        q = qkv[:, :, 0:seg] * scale                              # scale hoisted: one mul
        k = qkv[:, :, seg:2 * seg]
        v = qkv[:, :, 2 * seg:3 * seg]

        # --- scores: batched over heads, contract last dims (no transpose) ---
        s = lax.dot_general(
            q.astype(jnp.bfloat16), k.astype(jnp.bfloat16),
            dimension_numbers=(((2,), (2,)), ((0,), (0,))),
            preferred_element_type=jnp.float32)                   # (H, T, T) f32

        # causal mask (True = masked), same as torch.triu(..., diagonal=1)
        row = lax.broadcasted_iota(jnp.int32, (H, T, T), 1)
        col = lax.broadcasted_iota(jnp.int32, (H, T, T), 2)
        s = jnp.where(col > row, jnp.float32(-1e30), s)           # finite: NaN-safe

        # softmax in f32; dropout=0 -> identity
        m = jnp.max(s, axis=-1, keepdims=True)
        p = jnp.exp(s - m)
        l = jnp.sum(p, axis=-1, keepdims=True)
        a = p * pl.reciprocal(l, approx=True)

        # --- PV: batched over heads ---
        o = lax.dot_general(
            a.astype(jnp.bfloat16), v.astype(jnp.bfloat16),
            dimension_numbers=(((2,), (1,)), ((0,), (0,))),
            preferred_element_type=jnp.float32)                   # (H, T, SEG) f32

        # --- folded (out_proj @ projection): per-head contraction, f32 sum ---
        # (H,T,SEG) x (H,SEG,OPAD) -> (H,T,OPAD); sum over heads == concat @ Wfold
        per_head_out = lax.dot_general(
            o.astype(jnp.bfloat16), wout_ref[...],
            dimension_numbers=(((2,), (1,)), ((0,), (0,))),
            preferred_element_type=jnp.float32)
        out = jnp.sum(per_head_out, axis=0) + bout_ref[...]       # (T, OPAD) lane-dense
        out_ref[...] = out.astype(out_ref.dtype)

    return kernel


def prepare_params(params, *, num_heads, dropout_rate=0.0):
    """One-time parameter preparation (hoisted out of the per-call path).

    Builds the per-head, lane-aligned fused QKV weight and folds
    out_proj @ projection into a single per-head weight.
    """
    # Guard: the Wo@Wp fold is exact only with dropout=0 and no nonlinearity
    # between out_proj and the projection Linear.
    assert dropout_rate == 0.0, "Wo@Wp fold requires dropout_rate == 0"

    E = params["wq"].shape[0]
    O = params["wp"].shape[1]
    H = num_heads
    Dh = E // H
    OPAD = ((O + 127) // 128) * 128

    def per_head_w(w):   # (E, E) -> (H, E, Dh)
        return w.reshape(E, H, Dh).transpose(1, 0, 2)

    def per_head_b(b):   # (1, E) -> (H, 1, Dh)
        return b.reshape(1, H, Dh).transpose(1, 0, 2)

    # fused per-head QKV weight: segments padded to SEG lanes with zeros
    w_heads = jnp.zeros((H, E, 3 * SEG), jnp.float32)
    w_heads = w_heads.at[:, :, 0:Dh].set(per_head_w(params["wq"]))
    w_heads = w_heads.at[:, :, SEG:SEG + Dh].set(per_head_w(params["wk"]))
    w_heads = w_heads.at[:, :, 2 * SEG:2 * SEG + Dh].set(per_head_w(params["wv"]))

    b_heads = jnp.zeros((H, 1, 3 * SEG), jnp.float32)
    b_heads = b_heads.at[:, :, 0:Dh].set(per_head_b(params["bq"]))
    b_heads = b_heads.at[:, :, SEG:SEG + Dh].set(per_head_b(params["bk"]))
    b_heads = b_heads.at[:, :, 2 * SEG:2 * SEG + Dh].set(per_head_b(params["bv"]))

    # fold out_proj and the final Linear (exact: dropout=0, no nonlinearity)
    wfold = params["wo"] @ params["wp"]                    # (E, O)
    bfold = params["bo"] @ params["wp"] + params["bp"]     # (1, O)

    wout_heads = jnp.zeros((H, SEG, OPAD), jnp.float32)
    wout_heads = wout_heads.at[:, 0:Dh, 0:O].set(wfold.reshape(H, Dh, O))
    bout = jnp.zeros((1, OPAD), jnp.float32).at[:, 0:O].set(bfold)

    return dict(
        w_heads=w_heads.astype(jnp.bfloat16),   # bf16 MXU operand
        b_heads=b_heads,                        # f32, added post-MXU
        wout_heads=wout_heads.astype(jnp.bfloat16),
        bout=bout,
        num_heads=H, head_dim=Dh, embed_dim=E, out_dim=O, opad=OPAD,
    )


def usta_mha_forward(x, prep, *, context_length):
    """x: (T, E) float32.  Returns (min(T, context_length), output_dim) float32."""
    x = x[:context_length]                       # as the PyTorch forward does
    T, E = x.shape
    H, Dh = prep["num_heads"], prep["head_dim"]
    OPAD, O = prep["opad"], prep["out_dim"]
    scale = 1.0 / math.sqrt(Dh)

    def full(shape):
        n = len(shape)
        return pl.BlockSpec(shape, lambda i, _n=n: (0,) * _n)

    out_padded = pl.pallas_call(
        _mha_kernel(H, Dh, SEG, scale),
        out_shape=jax.ShapeDtypeStruct((T, OPAD), jnp.float32),
        grid=(1,),
        in_specs=[
            full((T, E)),              # x (f32; cast to bf16 inside the kernel)
            full((H, E, 3 * SEG)),     # per-head fused Wqkv (bf16, lane-padded)
            full((H, 1, 3 * SEG)),     # per-head fused bias (f32)
            full((H, SEG, OPAD)),      # folded per-head output weight (bf16)
            full((1, OPAD)),           # folded output bias (f32)
        ],
        out_specs=full((T, OPAD)),
        compiler_params=pltpu.CompilerParams(
            # single program; switch to ("parallel", ...) once the query axis is
            # tiled over a grid (v7x 2-TC win) -- see TODO above.
            dimension_semantics=("arbitrary",)),
    )(x, prep["w_heads"], prep["b_heads"], prep["wout_heads"], prep["bout"])

    return out_padded[:, :O]


def make_params(key, embedding_dim, output_dim):
    """Deterministic synthetic parameters matching nn.MultiheadAttention +
    nn.Linear shapes (weights stored pre-transposed for x @ W)."""
    E, O = embedding_dim, output_dim
    ks = jax.random.split(key, 8)
    s = 0.1
    wq = s * jax.random.normal(ks[0], (E, E), jnp.float32)
    wk = s * jax.random.normal(ks[1], (E, E), jnp.float32)
    wv = s * jax.random.normal(ks[2], (E, E), jnp.float32)
    bq = s * jax.random.normal(ks[3], (1, E), jnp.float32)
    bk = jnp.zeros((1, E), jnp.float32)
    bv = s * jax.random.normal(ks[4], (1, E), jnp.float32)
    wo = s * jax.random.normal(ks[5], (E, E), jnp.float32)   # out_proj.weight.T
    bo = jnp.zeros((1, E), jnp.float32)
    wp = s * jax.random.normal(ks[6], (E, O), jnp.float32)   # projection.weight.T
    bp = s * jax.random.normal(ks[7], (1, O), jnp.float32)
    return dict(wq=wq, wk=wk, wv=wv, bq=bq, bk=bk, bv=bv,
                wo=wo, bo=bo, wp=wp, bp=bp)


def reference_forward(x, params, *, context_length, num_heads):
    """Pure-JAX f32 reference mirroring torch.nn.MultiheadAttention semantics."""
    x = x[:context_length]
    T, E = x.shape
    Dh = E // num_heads
    q = x @ params["wq"] + params["bq"]
    k = x @ params["wk"] + params["bk"]
    v = x @ params["wv"] + params["bv"]
    q = q.reshape(T, num_heads, Dh).transpose(1, 0, 2) / math.sqrt(Dh)
    k = k.reshape(T, num_heads, Dh).transpose(1, 0, 2)
    v = v.reshape(T, num_heads, Dh).transpose(1, 0, 2)
    s = jnp.einsum("htd,hsd->hts", q, k)
    mask = jnp.triu(jnp.ones((T, T), bool), k=1)
    s = jnp.where(mask[None], -jnp.inf, s)
    a = jax.nn.softmax(s, axis=-1)
    o = jnp.einsum("hts,hsd->htd", a, v).transpose(1, 0, 2).reshape(T, E)
    y = o @ params["wo"] + params["bo"]
    return y @ params["wp"] + params["bp"]


if __name__ == "__main__":
    embedding_dim = 32
    output_dim = 16
    context_length = 8
    num_heads = 4
    T = 8   # number of tokens (<= context_length)

    key = jax.random.PRNGKey(0)
    kx, kp = jax.random.split(key)
    x = jax.random.normal(kx, (T, embedding_dim), jnp.float32)
    params = make_params(kp, embedding_dim, output_dim)

    # one-time parameter prep (hoisted out of the per-call path)
    prep = prepare_params(params, num_heads=num_heads, dropout_rate=0.0)
    prep = jax.tree_util.tree_map(
        lambda a: jax.block_until_ready(a) if isinstance(a, jax.Array) else a, prep)

    out = usta_mha_forward(x, prep, context_length=context_length)
    out = jax.block_until_ready(out)

    ref = reference_forward(x, params,
                            context_length=context_length,
                            num_heads=num_heads)
    assert out.shape == (T, output_dim)
    # bf16 MXU operands + approx reciprocal vs a pure-f32 reference -> loosened tolerance
    assert jnp.allclose(out, ref, atol=3e-2, rtol=3e-2), \
        float(jnp.max(jnp.abs(out - ref)))

    print("KERNEL_OK")
</pallas_src>

<mosaic_0001>
module attributes {stable_mosaic.version = 11 : i64} {
  func.func @kernel(%arg0: i32, %arg1: memref<8x32xf32, #tpu.memory_space<vmem>>, %arg2: memref<4x32x384xbf16, #tpu.memory_space<vmem>>, %arg3: memref<4x1x384xf32, #tpu.memory_space<vmem>>, %arg4: memref<4x128x128xbf16, #tpu.memory_space<vmem>>, %arg5: memref<1x128xf32, #tpu.memory_space<vmem>>, %arg6: memref<8x128xf32, #tpu.memory_space<vmem>>) attributes {dimension_semantics = [#tpu.dimension_semantics<arbitrary>], iteration_bounds = array<i64: 1>, scalar_prefetch = 0 : i64, scratch_operands = 0 : i64, tpu.core_type = #tpu.core_type<tc>, window_params = [{pipeline_mode = #tpu.pipeline_mode<synchronous>, transform_indices = @transform_0, window_bounds = array<i64: 8, 32>}, {pipeline_mode = #tpu.pipeline_mode<synchronous>, transform_indices = @transform_1, window_bounds = array<i64: 4, 32, 384>}, {pipeline_mode = #tpu.pipeline_mode<synchronous>, transform_indices = @transform_2, window_bounds = array<i64: 4, 1, 384>}, {pipeline_mode = #tpu.pipeline_mode<synchronous>, transform_indices = @transform_3, window_bounds = array<i64: 4, 128, 128>}, {pipeline_mode = #tpu.pipeline_mode<synchronous>, transform_indices = @transform_4, window_bounds = array<i64: 1, 128>}, {pipeline_mode = #tpu.pipeline_mode<synchronous>, transform_indices = @transform_5, window_bounds = array<i64: 8, 128>}]} {
    %c0 = arith.constant 0 : index
    %c0_0 = arith.constant 0 : index
    %0 = vector.load %arg1[%c0, %c0_0] : memref<8x32xf32, #tpu.memory_space<vmem>>, vector<8x32xf32>
    %1 = arith.truncf %0 : vector<8x32xf32> to vector<8x32xbf16>
    %2 = vector.shape_cast %1 : vector<8x32xbf16> to vector<1x8x32xbf16>
    %3 = vector.shape_cast %2 : vector<1x8x32xbf16> to vector<1x8x32xbf16>
    %4 = vector.broadcast %3 : vector<1x8x32xbf16> to vector<4x8x32xbf16>
    %c0_1 = arith.constant 0 : index
    %c0_2 = arith.constant 0 : index
    %c0_3 = arith.constant 0 : index
    %5 = vector.load %arg2[%c0_1, %c0_2, %c0_3] : memref<4x32x384xbf16, #tpu.memory_space<vmem>>, vector<4x32x384xbf16>
    %cst = arith.constant dense<0.000000e+00> : vector<4x8x384xf32>
    %6 = tpu.matmul %4, %5, %cst {dimension_numbers = #tpu.dot_dimension_numbers<[2], [1], [1], [2], [0, 0, 0, 1, 1, 2], [0], [0]>} : vector<4x8x32xbf16>, vector<4x32x384xbf16>, vector<4x8x384xf32> -> vector<4x8x384xf32>
    %c0_4 = arith.constant 0 : index
    %c0_5 = arith.constant 0 : index
    %c0_6 = arith.constant 0 : index
    %7 = vector.load %arg3[%c0_4, %c0_5, %c0_6] : memref<4x1x384xf32, #tpu.memory_space<vmem>>, vector<4x1x384xf32>
    %8 = vector.broadcast %7 : vector<4x1x384xf32> to vector<4x8x384xf32>
    %9 = arith.addf %6, %8 : vector<4x8x384xf32>
    %10 = vector.extract_strided_slice %9 {offsets = [0, 0, 0], sizes = [4, 8, 128], strides = [1, 1, 1]} : vector<4x8x384xf32> to vector<4x8x128xf32>
    %cst_7 = arith.constant 0.353553385 : f32
    %11 = vector.broadcast %cst_7 : f32 to vector<4x8x128xf32>
    %12 = arith.mulf %10, %11 : vector<4x8x128xf32>
    %13 = vector.extract_strided_slice %9 {offsets = [0, 0, 128], sizes = [4, 8, 128], strides = [1, 1, 1]} : vector<4x8x384xf32> to vector<4x8x128xf32>
    %14 = vector.extract_strided_slice %9 {offsets = [0, 0, 256], sizes = [4, 8, 128], strides = [1, 1, 1]} : vector<4x8x384xf32> to vector<4x8x128xf32>
    %15 = arith.truncf %12 : vector<4x8x128xf32> to vector<4x8x128xbf16>
    %16 = arith.truncf %13 : vector<4x8x128xf32> to vector<4x8x128xbf16>
    %cst_8 = arith.constant dense<0.000000e+00> : vector<4x8x8xf32>
    %17 = tpu.matmul %15, %16, %cst_8 {dimension_numbers = #tpu.dot_dimension_numbers<[2], [2], [1], [1], [0, 0, 0, 1, 1, 1], [0], [0]>} : vector<4x8x128xbf16>, vector<4x8x128xbf16>, vector<4x8x8xf32> -> vector<4x8x8xf32>
    %18 = tpu.iota {dimensions = array<i32: 1>} : vector<4x8x8xi32>
    %19 = tpu.iota {dimensions = array<i32: 2>} : vector<4x8x8xi32>
    %20 = arith.cmpi sgt, %19, %18 : vector<4x8x8xi32>
    %cst_9 = arith.constant -1.000000e+30 : f32
    %21 = vector.broadcast %cst_9 : f32 to vector<4x8x8xf32>
    %22 = arith.select %20, %21, %17 : vector<4x8x8xi1>, vector<4x8x8xf32>
    %cst_10 = arith.constant dense<0xFF800000> : vector<4x8xf32>
    %23 = vector.multi_reduction <maximumf>, %22, %cst_10 [2] : vector<4x8x8xf32> to vector<4x8xf32>
    %24 = vector.shape_cast %23 : vector<4x8xf32> to vector<4x8x1xf32>
    %25 = vector.broadcast %24 : vector<4x8x1xf32> to vector<4x8x8xf32>
    %26 = arith.subf %22, %25 : vector<4x8x8xf32>
    %27 = math.exp %26 : vector<4x8x8xf32>
    %cst_11 = arith.constant dense<0.000000e+00> : vector<4x8xf32>
    %28 = vector.multi_reduction <add>, %27, %cst_11 [2] : vector<4x8x8xf32> to vector<4x8xf32>
    %29 = vector.shape_cast %28 : vector<4x8xf32> to vector<4x8x1xf32>
    %30 = tpu.reciprocal %29 {approx = true} : vector<4x8x1xf32> -> vector<4x8x1xf32>
    %31 = vector.broadcast %30 : vector<4x8x1xf32> to vector<4x8x8xf32>
    %32 = arith.mulf %27, %31 : vector<4x8x8xf32>
    %33 = arith.truncf %32 : vector<4x8x8xf32> to vector<4x8x8xbf16>
    %34 = arith.truncf %14 : vector<4x8x128xf32> to vector<4x8x128xbf16>
    %cst_12 = arith.constant dense<0.000000e+00> : vector<4x8x128xf32>
    %35 = tpu.matmul %33, %34, %cst_12 {dimension_numbers = #tpu.dot_dimension_numbers<[2], [1], [1], [2], [0, 0, 0, 1, 1, 2], [0], [0]>} : vector<4x8x8xbf16>, vector<4x8x128xbf16>, vector<4x8x128xf32> -> vector<4x8x128xf32>
    %36 = arith.truncf %35 : vector<4x8x128xf32> to vector<4x8x128xbf16>
    %c0_13 = arith.constant 0 : index
    %c0_14 = arith.constant 0 : index
    %c0_15 = arith.constant 0 : index
    %37 = vector.load %arg4[%c0_13, %c0_14, %c0_15] : memref<4x128x128xbf16, #tpu.memory_space<vmem>>, vector<4x128x128xbf16>
    %cst_16 = arith.constant dense<0.000000e+00> : vector<4x8x128xf32>
    %38 = tpu.matmul %36, %37, %cst_16 {dimension_numbers = #tpu.dot_dimension_numbers<[2], [1], [1], [2], [0, 0, 0, 1, 1, 2], [0], [0]>} : vector<4x8x128xbf16>, vector<4x128x128xbf16>, vector<4x8x128xf32> -> vector<4x8x128xf32>
    %cst_17 = arith.constant dense<0.000000e+00> : vector<8x128xf32>
    %39 = vector.multi_reduction <add>, %38, %cst_17 [0] : vector<4x8x128xf32> to vector<8x128xf32>
    %c0_18 = arith.constant 0 : index
    %c0_19 = arith.constant 0 : index
    %40 = vector.load %arg5[%c0_18, %c0_19] : memref<1x128xf32, #tpu.memory_space<vmem>>, vector<1x128xf32>
    %41 = vector.broadcast %40 : vector<1x128xf32> to vector<8x128xf32>
    %42 = arith.addf %39, %41 : vector<8x128xf32>
    %c0_20 = arith.constant 0 : index
    %c0_21 = arith.constant 0 : index
    %43 = vector.load %arg6[%c0_20, %c0_21] : memref<8x128xf32, #tpu.memory_space<vmem>>, vector<8x128xf32>
    tpu.vector_store %arg6[%c0_20, %c0_21], %42 {strides = array<i32>} : memref<8x128xf32, #tpu.memory_space<vmem>>, vector<8x128xf32>,
    return
  }
  func.func @transform_0(%arg0: i32) -> (i32, i32) {
    %c0_i32 = arith.constant 0 : i32
    %c0_i32_0 = arith.constant 0 : i32
    %c0_i32_1 = arith.constant 0 : i32
    return %c0_i32, %c0_i32_0 : i32, i32
  }
  func.func @transform_1(%arg0: i32) -> (i32, i32, i32) {
    %c0_i32 = arith.constant 0 : i32
    %c0_i32_0 = arith.constant 0 : i32
    %c0_i32_1 = arith.constant 0 : i32
    %c0_i32_2 = arith.constant 0 : i32
    return %c0_i32, %c0_i32_0, %c0_i32_1 : i32, i32, i32
  }
  func.func @transform_2(%arg0: i32) -> (i32, i32, i32) {
    %c0_i32 = arith.constant 0 : i32
    %c0_i32_0 = arith.constant 0 : i32
    %c0_i32_1 = arith.constant 0 : i32
    %c0_i32_2 = arith.constant 0 : i32
    return %c0_i32, %c0_i32_0, %c0_i32_1 : i32, i32, i32
  }
  func.func @transform_3(%arg0: i32) -> (i32, i32, i32) {
    %c0_i32 = arith.constant 0 : i32
    %c0_i32_0 = arith.constant 0 : i32
    %c0_i32_1 = arith.constant 0 : i32
    %c0_i32_2 = arith.constant 0 : i32
    return %c0_i32, %c0_i32_0, %c0_i32_1 : i32, i32, i32
  }
  func.func @transform_4(%arg0: i32) -> (i32, i32) {
    %c0_i32 = arith.constant 0 : i32
    %c0_i32_0 = arith.constant 0 : i32
    %c0_i32_1 = arith.constant 0 : i32
    return %c0_i32, %c0_i32_0 : i32, i32
  }
  func.func @transform_5(%arg0: i32) -> (i32, i32) {
    %c0_i32 = arith.constant 0 : i32
    %c0_i32_0 = arith.constant 0 : i32
    %c0_i32_1 = arith.constant 0 : i32
    return %c0_i32, %c0_i32_0 : i32, i32
  }
}

</mosaic_0001>

<bundles_post_ra>
// kernel: tpu_custom_call.1
= control target key start
LH: loop header
LB: loop body
LE: loop exit
PB: predicated region body
PF: predicated region fallthrough
CT: control target
= control target key end

     0   :  { %10 = vsyncpa [#allocation3], 0  ;;  %s1537_s0 = inlined_call_operand.hbm [shape: f32[8,32], index: 0, kind: input, shape index: {}]   ;;  %s1538_s1 = inlined_call_operand.hbm [shape: bf16[4,32,384], index: 1, kind: input, shape index: {}]   ;;  %s1539_s2 = inlined_call_operand.hbm [shape: f32[4,1,384], index: 2, kind: input, shape index: {}]   ;;  %s1540_s3 = inlined_call_operand.hbm [shape: bf16[4,128,128], index: 3, kind: input, shape index: {}]   ;;  %s1541_s4 = inlined_call_operand.vmem [shape: f32[1,128], index: 4, kind: input, shape index: {}]   ;;  %s1542_s5 = inlined_call_operand.hbm [shape: f32[8,128], index: 5, kind: output, shape index: {}]  }
   0x1   :  { %11 = vsyncpa [#allocation6], 0 }
   0x2   :  { %12 = vsyncpa [#allocation9], 0  ;;  %s29_s20 = sshll.u32 %s1538_s1, 4  ;;  %s30_s20 = int_to_ptr.hbm [resolvable:$true] %s29_s20 }
   0x3   :  { %13 = vsyncpa [#allocation4], 0  ;;  %s1432_s21 = smov [#allocation5]   ;;  %s19_s25 = sshll.u32 %s1537_s0, 4  ;;  %s20_s25 = int_to_ptr.hbm [resolvable:$true] %s19_s25 }
   0x4   :  { %s31_s22 = sshll.u32 %s1432_s21, 4  ;;  %s1433_s26 = smov 192   ;;  %s32_s22 = int_to_ptr.vmem [resolvable:$true] %s31_s22 }
   0x5   :  { %s1434_s27 = smov 12   ;;  %s1435_s28 = smov [#allocation2]  }
   0x6   :  { %37 = dma.hbm_to_vmem [thread:$0]  %s30_s20, 3072, %s32_s22, [#allocation6], %s1433_s26, %s1433_s26, %s1434_s27  }
   0x7   :  { %s21_s29 = sshll.u32 %s1435_s28, 4  ;;  %s42_s7 = sshll.u32 %s1539_s2, 4  ;;  %s22_s29 = int_to_ptr.vmem [resolvable:$true] %s21_s29  ;;  %s43_s7 = int_to_ptr.hbm [resolvable:$true] %s42_s7 }
   0x8   :  { %24 = dma.hbm_to_vmem [thread:$0]  %s20_s25, 128, %s22_s29, [#allocation3]  }
   0x9   :  { %s1436_s1 = smov [#allocation7]   ;;  %s55_s0 = sshll.u32 %s1540_s3, 4  ;;  %s56_s0 = int_to_ptr.hbm [resolvable:$true] %s55_s0 }
   0xa   :  { %s44_s8 = sshll.u32 %s1436_s1, 4  ;;  %s1437_s11 = smov 48   ;;  %s45_s8 = int_to_ptr.vmem [resolvable:$true] %s44_s8 }
   0xb   :  { %s1438_s12 = smov 3   ;;  %s1439_s13 = smov [#allocation8]  }
   0xc   :  { %50 = dma.hbm_to_vmem [thread:$0]  %s43_s7, 192, %s45_s8, [#allocation6], %s1437_s11, %s1437_s11, %s1438_s12  }
   0xd   :  { %s57_s14 = sshll.u32 %s1439_s13, 4  ;;  %s1440_s15 = smov 64   ;;  %s58_s14 = int_to_ptr.vmem [resolvable:$true] %s57_s14 }
   0xe   :  { %s1441_s16 = smov 4  }
   0xf   :  { %63 = dma.hbm_to_vmem [thread:$0]  %s56_s0, 4096, %s58_s14, [#allocation9], %s1440_s15, %s1440_s15, %s1441_s16  }
  0x10   :  { %1424 = dma.done.wait [#allocation3], 128  }
  0x11   :  { %1425 = vsyncadd [#allocation3], 4294967168 }
  0x12   :  { %1426 = dma.done.wait [#allocation6], 3264  }
  0x13   :  { %1427 = vsyncadd [#allocation6], 4294964032 }
  0x14   :  { %1428 = dma.done.wait [#allocation9], 4096  }
  0x15   :  { %1429 = vsyncadd [#allocation9], 4294963200  ;;  %v994_v0 = vld [vmem:[#allocation5 + $0x18] sm:$0xf]  ;;  %v1224_v1 = vld [vmem:[#allocation5 + $0x20] sm:$0xf0] }
  0x16   :  { %v1223_v2 = vld [vmem:[#allocation5 + $0x1c] sm:$0xf]  ;;  %v995_v3 = vor.u32 %v1224_v1, %v994_v0  ;;  %v996_v4 = vld [vmem:[#allocation5 + $0x24] sm:$0xf0]  ;;  %v1002_v5 = vld [vmem:[#allocation5 + $0x20] sm:$0xf] }
  0x17   :  { %v1225_v6 = vld [vmem:[#allocation5 + $0x28] sm:$0xf0]  ;;  %v999_v7 = vor.u32 %v1223_v2, %v996_v4  ;;  %v1021_v9 = vld [vmem:[#allocation5 + $0x48] sm:$0xf]  ;;  %v1230_v10 = vld [vmem:[#allocation5 + $0x50] sm:$0xf0] }
  0x18   :  { %v1003_v8 = vor.u32 %v1225_v6, %v1002_v5  ;;  %v982_v11 = vld [vmem:[#allocation5] sm:$0xf]  ;;  %191 = vmatpush.bf16.msra.mxu0 %v995_v3  ;;  %v1022_v12 = vor.u32 %v1230_v10, %v1021_v9  ;;  %v1221_v13 = vld [vmem:[#allocation5 + $0x8] sm:$0xf0]  ;;  %v1220_v14 = vld [vmem:[#allocation5 + $0x4] sm:$0xf] }
  0x19   :  { %v984_v15 = vld [vmem:[#allocation5 + $0xc] sm:$0xf0]  ;;  %204 = vmatpush.bf16.msra.mxu1 %v999_v7  ;;  %v983_v16 = vor.u32 %v1221_v13, %v982_v11  ;;  %v990_v18 = vld [vmem:[#allocation5 + $0x8] sm:$0xf]  ;;  %v1222_v19 = vld [vmem:[#allocation5 + $0x10] sm:$0xf0] }
  0x1a   :  { %217 = vmatpush.bf16.msra.mxu2 %v1003_v8  ;;  %v987_v17 = vor.u32 %v1220_v14, %v984_v15  ;;  %v1009_v20 = vld [vmem:[#allocation5 + $0x30] sm:$0xf]  ;;  %262 = vmatpush.bf16.msra.mxu3 %v1022_v12  ;;  %v991_v21 = vor.u32 %v1222_v19, %v990_v18  ;;  %v1227_v22 = vld [vmem:[#allocation5 + $0x38] sm:$0xf0]  ;;  %vm181_vm0 = vcmask 261120   ;;  %vm566_vm1 = vcmask 1043456  }
  0x1b   :  { %v83_v23 = vld [vmem:[#allocation2] sm:$0xff]  ;;  %v1229_v24 = vld [vmem:[#allocation5 + $0x4c] sm:$0xf]  ;;  %v1010_v25 = vor.u32 %v1227_v22, %v1009_v20  ;;  %v1236_v29 = vld [vmem:[#allocation5 + $0x80] sm:$0xf0]  ;;  %vm510_vm3 = vcmask 64512  }
  0x1c   :  { %v1485_v26 = vpack.c.bf16 %v83_v23, %v83_v23  ;;  %v1023_v27 = vld [vmem:[#allocation5 + $0x54] sm:$0xf0]  ;;  %192 = vmatpush.bf16.msra.mxu0 %v983_v16  ;;  %v1235_v32 = vld [vmem:[#allocation5 + $0x7c] sm:$0xf]  ;;  %v1050_v33 = vld [vmem:[#allocation5 + $0x84] sm:$0xf0] }
  0x1d   :  { %v1048_v28 = vld [vmem:[#allocation5 + $0x78] sm:$0xf]  ;;  %v1026_v30 = vor.u32 %v1229_v24, %v1023_v27  ;;  %v1226_v34 = vld [vmem:[#allocation5 + $0x34] sm:$0xf]  ;;  %205 = vmatpush.bf16.msra.mxu1 %v987_v17  ;;  %v1011_v35 = vld [vmem:[#allocation5 + $0x3c] sm:$0xf0]  ;;  %v1053_v38 = vor.u32 %v1235_v32, %v1050_v33 }
  0x1e   :  { %v1049_v31 = vor.u32 %v1236_v29, %v1048_v28  ;;  %218 = vmatpush.bf16.msra.mxu2 %v991_v21  ;;  %v1036_v36 = vld [vmem:[#allocation5 + $0x60] sm:$0xf]  ;;  %v1233_v37 = vld [vmem:[#allocation5 + $0x68] sm:$0xf0]  ;;  %263 = vmatpush.bf16.msra.mxu3 %v1010_v25  ;;  %v1014_v39 = vor.u32 %v1226_v34, %v1011_v35  ;;  %v1232_v40 = vld [vmem:[#allocation5 + $0x64] sm:$0xf] }
  0x1f   :  { %v1038_v41 = vld [vmem:[#allocation5 + $0x6c] sm:$0xf0]  ;;  %1004 = vmatmul.msk.bf16.vlgmr.msra.gmra.mxu0 %vm181_vm0, %v1485_v26  ;;  %v1037_v43 = vor.u32 %v1233_v37, %v1036_v36  ;;  %v1231_v44 = vld [vmem:[#allocation5 + $0x58] sm:$0xf0]  ;;  %v1017_v45 = vld [vmem:[#allocation5 + $0x38] sm:$0xf] }
  0x20   :  { %275 = vmatpush.bf16.msrb.mxu0 %v1026_v30  ;;  %v1029_v42 = vld [vmem:[#allocation5 + $0x50] sm:$0xf]  ;;  %v1228_v46 = vld [vmem:[#allocation5 + $0x40] sm:$0xf0]  ;;  %1005 = vmatmul.msk.bf16.vlgmr.msra.gmra.mxu1 %vm181_vm0, %v1485_v26  ;;  %v1241_v48 = vld [vmem:[#allocation5 + $0xac] sm:$0xf]  ;;  %v1041_v55 = vor.u32 %v1232_v40, %v1038_v41 }
  0x21   :  { %1006 = vmatmul.msk.bf16.vlgmr.msra.gmra.mxu2 %vm181_vm0, %v1485_v26  ;;  %v1030_v47 = vor.u32 %v1231_v44, %v1029_v42  ;;  %v1077_v49 = vld [vmem:[#allocation5 + $0xb4] sm:$0xf0]  ;;  %v1238_v50 = vld [vmem:[#allocation5 + $0x94] sm:$0xf]  ;;  %1031 = vmatmul.msk.bf16.vlgmr.msra.gmra.mxu3 %vm181_vm0, %v1485_v26  ;;  %v1065_v52 = vld [vmem:[#allocation5 + $0x9c] sm:$0xf0]  ;;  %v1018_v57 = vor.u32 %v1228_v46, %v1017_v45 }
  0x22   :  { %333 = vmatpush.bf16.msrb.mxu2 %v1049_v31  ;;  %v1080_v51 = vor.u32 %v1241_v48, %v1077_v49  ;;  %v1075_v53 = vld [vmem:[#allocation5 + $0xa8] sm:$0xf]  ;;  %v1242_v54 = vld [vmem:[#allocation5 + $0xb0] sm:$0xf0]  ;;  %346 = vmatpush.bf16.msrb.mxu3 %v1053_v38  ;;  %v1056_v56 = vld [vmem:[#allocation5 + $0x80] sm:$0xf]  ;;  %v1068_v61 = vor.u32 %v1238_v50, %v1065_v52 }
  0x23   :  { %288 = vmatpush.bf16.msrb.mxu1 %v1030_v47  ;;  %v1237_v58 = vld [vmem:[#allocation5 + $0x88] sm:$0xf0]  ;;  %v1044_v59 = vld [vmem:[#allocation5 + $0x68] sm:$0xf]  ;;  %v1234_v60 = vld [vmem:[#allocation5 + $0x70] sm:$0xf0]  ;;  %v1076_v62 = vor.u32 %v1242_v54, %v1075_v53 }
  0x24   :  { %276 = vmatpush.bf16.msrb.mxu0 %v1014_v39  ;;  %v1057_v63 = vor.u32 %v1237_v58, %v1056_v56  ;;  %v1063_v0 = vld [vmem:[#allocation5 + $0x90] sm:$0xf]  ;;  %v1239_v1 = vld [vmem:[#allocation5 + $0x98] sm:$0xf0]  ;;  %v1045_v2 = vor.u32 %v1234_v60, %v1044_v59  ;;  %v1071_v7 = vld [vmem:[#allocation5 + $0x98] sm:$0xf] }
  0x25   :  { %v1064_v3 = vor.u32 %v1239_v1, %v1063_v0  ;;  %v1083_v4 = vld [vmem:[#allocation5 + $0xb0] sm:$0xf]  ;;  %v1243_v5 = vld [vmem:[#allocation5 + $0xb8] sm:$0xf0]  ;;  %v1240_v8 = vld [vmem:[#allocation5 + $0xa0] sm:$0xf0] }
  0x26   :  { %334 = vmatpush.bf16.msrb.mxu2 %v1037_v43  ;;  %347 = vmatpush.bf16.msrb.mxu3 %v1041_v55  ;;  %v1084_v6 = vor.u32 %v1243_v5, %v1083_v4  ;;  %v1072_v9 = vor.u32 %v1240_v8, %v1071_v7  ;;  %v117_v10 = vld [vmem:[#allocation7] sm:$0x7]  ;;  %v118_v28 = vld [vmem:[#allocation7 + $0x3] sm:$0x7]  ;;  %v119_v38 = vld [vmem:[#allocation7 + $0x6] sm:$0x7] }
  0x27   :  { %289 = vmatpush.bf16.msrb.mxu1 %v1018_v57  ;;  %v125_v11 = vperm.slane %v117_v10, 0  ;;  %v126_v12 = vperm.slane %v117_v10, 1  ;;  %v127_v18 = vperm.slane %v117_v10, 2  ;;  %v129_v29 = vperm.slane %v118_v28, 1  ;;  %v120_v59 = vld [vmem:[#allocation7 + $0x9] sm:$0x7] }
  0x28   :  { %359 = vmatpush.bf16.msra.mxu0 %v1057_v63  ;;  %v128_v30 = vperm.slane %v118_v28, 0  ;;  %v130_v31 = vperm.slane %v118_v28, 2  ;;  %v132_v42 = vperm.slane %v119_v38, 1  ;;  %v131_v44 = vperm.slane %v119_v38, 0  ;;  %s1442_s17 = smov [#allocation10]   ;;  %s968_s21 = sshll.u32 %s1542_s5, 4  ;;  %s969_s21 = int_to_ptr.hbm [resolvable:$true] %s968_s21 }
  0x29   :  { %v133_v54 = vperm.slane %v119_v38, 2  ;;  %v134_v63 = vperm.slane %v120_v59, 0  ;;  %v135_v1 = vperm.slane %v120_v59, 1  ;;  %s966_s18 = sshll.u32 %s1442_s17, 4  ;;  %s967_s18 = int_to_ptr.vmem [resolvable:$true] %s966_s18 }
  0x2a   :  { %417 = vmatpush.bf16.msra.mxu2 %v1080_v51  ;;  %430 = vmatpush.bf16.msra.mxu3 %v1084_v6 }
  0x2b   :  { %404 = vmatpush.bf16.msra.mxu1 %v1076_v62 }
  0x2c   :  { %360 = vmatpush.bf16.msra.mxu0 %v1045_v2 }
  0x2e   :  { %418 = vmatpush.bf16.msra.mxu2 %v1068_v61  ;;  %431 = vmatpush.bf16.msra.mxu3 %v1072_v9 }
  0x2f   :  { %405 = vmatpush.bf16.msra.mxu1 %v1064_v3  ;;  %1032 = vmatmul.msk.bf16.vlgmr.msrb.gmra.mxu0 %vm181_vm0, %v1485_v26 }
  0x30   :  { %1033 = vmatmul.msk.bf16.vlgmr.msrb.gmra.mxu1 %vm181_vm0, %v1485_v26 }
  0x31   :  { %1058 = vmatmul.msk.bf16.vlgmr.msrb.gmra.mxu2 %vm181_vm0, %v1485_v26  ;;  %1059 = vmatmul.msk.bf16.vlgmr.msrb.gmra.mxu3 %vm181_vm0, %v1485_v26 }
  0x3f   :  { %1060 = vmatmul.msk.bf16.vlgmr.msra.gmra.mxu0 %vm181_vm0, %v1485_v26 }
  0x40   :  { %1085 = vmatmul.msk.bf16.vlgmr.msra.gmra.mxu1 %vm181_vm0, %v1485_v26 }
  0x41   :  { %1086 = vmatmul.msk.bf16.vlgmr.msra.gmra.mxu2 %vm181_vm0, %v1485_v26  ;;  %1087 = vmatmul.msk.bf16.vlgmr.msra.gmra.mxu3 %vm181_vm0, %v1485_v26 }
  0x9c   :  { %v194_v13 = vpop.f32.mrf.mxu0 }
  0x9d   :  { %v195_v14 = vadd.f32 %v194_v13, %v125_v11  ;;  %v207_v15 = vpop.f32.mrf.mxu1  ;;  %v501_v13 = vlaneseq }
  0x9e   :  { %v208_v16 = vadd.f32 %v207_v15, %v126_v12 }
  0x9f   :  { %v437_v19 = vmul.f32 0.35355338, %v195_v14  ;;  %v136_v14 = vperm.slane %v120_v59, 2 }
  0xa0   :  { %v445_v17 = vpack.c.bf16 %v208_v16, %v208_v16  ;;  %v502_v16 = vshrl.u32 %v501_v13, 7 }
  0xa1   :  { %v441_v24 = vpack.c.bf16 %v437_v19, %v437_v19 }
  0xa2   :  { %456 = vmatpush.bf16.xpose.msrb.mxu0 %v445_v17  ;;  %v504_v17 = vand.u32 127, %v501_v13  ;;  %v1246_v13 = vld [vmem:[#allocation8 + $0x10] sm:$0xff] }
  0xa4   :  { %v220_v20 = vpop.f32.mrf.mxu2  ;;  %v265_v22 = vpop.f32.mrf.mxu3  ;;  %vm505_vm2 = vcmp.gt.s32.totalorder %v504_v17, %v502_v16 }
  0xa5   :  { %v221_v21 = vadd.f32 %v220_v20, %v127_v18  ;;  %v196_v23 = vpop.f32.mrf.mxu0  ;;  %v209_v25 = vpop.f32.mrf.mxu1  ;;  %v266_v37 = vadd.f32 %v265_v22, %v128_v30 }
  0xa7   :  { %v559_v27 = vpack.c.bf16 %v221_v21, %v221_v21  ;;  %v438_v43 = vmul.f32 0.35355338, %v266_v37 }
  0xa9   :  { %v568_v26 = vsel %vm566_vm1, %v559_v27, 0  ;;  %457 = vmatmul.bf16.vlgmr.msrb.gmra.mxu0 %v441_v24  ;;  %v442_v51 = vpack.c.bf16 %v438_v43, %v438_v43 }
  0xaa   :  { %577 = vmatpush.bf16.msra.mxu0 %v568_v26 }
  0xac   :  { %v222_v32 = vpop.f32.mrf.mxu2  ;;  %v267_v33 = vpop.f32.mrf.mxu3 }
  0xad   :  { %v278_v34 = vpop.f32.mrf.mxu0  ;;  %v291_v36 = vpop.f32.mrf.mxu1 }
  0xae   :  { %v279_v35 = vadd.f32 %v278_v34, %v129_v29  ;;  %v292_v39 = vadd.f32 %v291_v36, %v130_v31 }
  0xb0   :  { %v446_v40 = vpack.c.bf16 %v279_v35, %v279_v35  ;;  %v560_v41 = vpack.c.bf16 %v292_v39, %v292_v39 }
  0xb2   :  { %469 = vmatpush.bf16.xpose.msrb.mxu1 %v446_v40  ;;  %v587_v45 = vsel %vm566_vm1, %v560_v41, 0 }
  0xb4   :  { %v336_v46 = vpop.f32.mrf.mxu2  ;;  %v349_v47 = vpop.f32.mrf.mxu3 }
  0xb5   :  { %v280_v48 = vpop.f32.mrf.mxu0  ;;  %v350_v49 = vadd.f32 %v349_v47, %v132_v42  ;;  %v293_v50 = vpop.f32.mrf.mxu1  ;;  %v337_v52 = vadd.f32 %v336_v46, %v131_v44 }
  0xb7   :  { %v447_v53 = vpack.c.bf16 %v350_v49, %v350_v49  ;;  %v439_v55 = vmul.f32 0.35355338, %v337_v52 }
  0xb9   :  { %470 = vmatmul.bf16.vlgmr.msrb.gmra.mxu1 %v442_v51  ;;  %482 = vmatpush.bf16.xpose.msrb.mxu2 %v447_v53  ;;  %v443_v62 = vpack.c.bf16 %v439_v55, %v439_v55 }
  0xba   :  { %596 = vmatpush.bf16.msra.mxu1 %v587_v45 }
  0xbc   :  { %v338_v56 = vpop.f32.mrf.mxu2  ;;  %v351_v57 = vpop.f32.mrf.mxu3 }
  0xbd   :  { %v362_v58 = vpop.f32.mrf.mxu0  ;;  %v407_v60 = vpop.f32.mrf.mxu1 }
  0xbe   :  { %v363_v61 = vadd.f32 %v362_v58, %v133_v54  ;;  %v408_v4 = vadd.f32 %v407_v60, %v134_v63 }
  0xc0   :  { %v561_v0 = vpack.c.bf16 %v363_v61, %v363_v61  ;;  %483 = vmatmul.bf16.vlgmr.msrb.gmra.mxu2 %v443_v62  ;;  %v440_v9 = vmul.f32 0.35355338, %v408_v4  ;;  %v1258_v4 = vld [vmem:[#allocation8 + $0x70] sm:$0xff] }
  0xc2   :  { %v606_v2 = vsel %vm566_vm1, %v561_v0, 0  ;;  %v444_v10 = vpack.c.bf16 %v440_v9, %v440_v9  ;;  %v1251_v0 = vld [vmem:[#allocation8 + $0x38] sm:$0xff] }
  0xc3   :  { %615 = vmatpush.bf16.msra.mxu2 %v606_v2  ;;  %v1259_v2 = vld [vmem:[#allocation8 + $0x78] sm:$0xff]  ;;  %756 = vmatpush.bf16.msrb.mxu0 %v1251_v0 }
  0xc4   :  { %v420_v3 = vpop.f32.mrf.mxu2  ;;  %v433_v12 = vpop.f32.mrf.mxu3  ;;  %817 = vmatpush.bf16.msrb.mxu1 %v1259_v2 }
  0xc5   :  { %v421_v5 = vadd.f32 %v420_v3, %v135_v1  ;;  %v364_v6 = vpop.f32.mrf.mxu0  ;;  %v409_v7 = vpop.f32.mrf.mxu1  ;;  %v434_v15 = vadd.f32 %v433_v12, %v136_v14  ;;  %v1250_v3 = vld [vmem:[#allocation8 + $0x30] sm:$0xff] }
  0xc6   :  { %v1249_v6 = vld [vmem:[#allocation8 + $0x28] sm:$0xff] }
  0xc7   :  { %v448_v8 = vpack.c.bf16 %v421_v5, %v421_v5  ;;  %v562_v18 = vpack.c.bf16 %v434_v15, %v434_v15  ;;  %757 = vmatpush.bf16.msrb.mxu0 %v1250_v3  ;;  %v1257_v7 = vld [vmem:[#allocation8 + $0x68] sm:$0xff] }
  0xc8   :  { %818 = vmatpush.bf16.msrb.mxu1 %v1258_v4  ;;  %v1245_v15 = vld [vmem:[#allocation8 + $0x8] sm:$0xff] }
  0xc9   :  { %495 = vmatpush.bf16.xpose.msrb.mxu3 %v448_v8  ;;  %v625_v19 = vsel %vm566_vm1, %v562_v18, 0  ;;  %v1248_v8 = vld [vmem:[#allocation8 + $0x20] sm:$0xff] }
  0xcb   :  { %758 = vmatpush.bf16.msrb.mxu0 %v1249_v6 }
  0xcc   :  { %v422_v11 = vpop.f32.mrf.mxu2  ;;  %v435_v20 = vpop.f32.mrf.mxu3  ;;  %819 = vmatpush.bf16.msrb.mxu1 %v1257_v7 }
  0xcd   :  { %v1247_v11 = vld [vmem:[#allocation8 + $0x18] sm:$0xff]  ;;  %v1256_v20 = vld [vmem:[#allocation8 + $0x60] sm:$0xff] }
  0xcf   :  { %759 = vmatpush.bf16.msrb.mxu0 %v1248_v8 }
  0xd0   :  { %496 = vmatmul.bf16.vlgmr.msrb.gmra.mxu3 %v444_v10  ;;  %820 = vmatpush.bf16.msrb.mxu1 %v1256_v20 }
  0xd1   :  { %634 = vmatpush.bf16.msra.mxu3 %v625_v19  ;;  %v1244_v19 = vld [vmem:[#allocation8] sm:$0xff] }
  0xd3   :  { %760 = vmatpush.bf16.msrb.mxu0 %v1247_v11 }
  0xd7   :  { %761 = vmatpush.bf16.msrb.mxu0 %v1246_v13 }
  0xdb   :  { %762 = vmatpush.bf16.msrb.mxu0 %v1245_v15 }
  0xdf   :  { %763 = vmatpush.bf16.msrb.mxu0 %v1244_v19 }
 0x126   :  { %v458_v21 = vpop.f32.mrf.mxu0 }
 0x127   :  { %v506_v22 = vsel %vm505_vm2, -1e+30, %v458_v21  ;;  %v1255_v21 = vld [vmem:[#allocation8 + $0x58] sm:$0xff] }
 0x128   :  { %v511_v23 = vsel %vm510_vm3, %v506_v22, -inf  ;;  %821 = vmatpush.bf16.msrb.mxu1 %v1255_v21 }
 0x129   :  { %512 = vmax.xlane.f32.xlu1 %v511_v23  ;;  %v1254_v23 = vld [vmem:[#allocation8 + $0x50] sm:$0xff] }
 0x12c   :  { %822 = vmatpush.bf16.msrb.mxu1 %v1254_v23 }
 0x12e   :  { %v460_v24 = vpop.f32.mrf.mxu0 }
 0x12f   :  { %v1266_v24 = vld [vmem:[#allocation8 + $0xb0] sm:$0xff] }
 0x136   :  { %v471_v25 = vpop.f32.mrf.mxu1 }
 0x137   :  { %v507_v27 = vsel %vm505_vm2, -1e+30, %v471_v25  ;;  %v1253_v25 = vld [vmem:[#allocation8 + $0x48] sm:$0xff] }
 0x138   :  { %v514_v28 = vsel %vm510_vm3, %v507_v27, -inf  ;;  %823 = vmatpush.bf16.msrb.mxu1 %v1253_v25 }
 0x139   :  { %515 = vmax.xlane.f32.xlu1 %v514_v28  ;;  %v1252_v28 = vld [vmem:[#allocation8 + $0x40] sm:$0xff] }
 0x13c   :  { %824 = vmatpush.bf16.msrb.mxu1 %v1252_v28 }
 0x13e   :  { %v473_v26 = vpop.f32.mrf.mxu1 }
 0x13f   :  { %v1264_v26 = vld [vmem:[#allocation8 + $0xa0] sm:$0xff] }
 0x143   :  { %v484_v29 = vpop.f32.mrf.mxu2 }
 0x144   :  { %v508_v30 = vsel %vm505_vm2, -1e+30, %v484_v29  ;;  %v1263_v29 = vld [vmem:[#allocation8 + $0x98] sm:$0xff] }
 0x145   :  { %v517_v31 = vsel %vm510_vm3, %v508_v30, -inf }
 0x146   :  { %518 = vmax.xlane.f32.xlu0 %v517_v31  ;;  %v1262_v31 = vld [vmem:[#allocation8 + $0x90] sm:$0xff] }
 0x14b   :  { %v486_v32 = vpop.f32.mrf.mxu2 }
 0x14c   :  { %v1274_v32 = vld [vmem:[#allocation8 + $0xf0] sm:$0xff] }
 0x153   :  { %v497_v33 = vpop.f32.mrf.mxu3 }
 0x154   :  { %v509_v34 = vsel %vm505_vm2, -1e+30, %v497_v33  ;;  %v1273_v33 = vld [vmem:[#allocation8 + $0xe8] sm:$0xff] }
 0x155   :  { %v520_v35 = vsel %vm510_vm3, %v509_v34, -inf }
 0x156   :  { %521 = vmax.xlane.f32.xlu0 %v520_v35 }
 0x15b   :  { %v499_v36 = vpop.f32.mrf.mxu3 }
 0x19c   :  { %v513_v37 = vpop.xlane.xlu1 %512 }
 0x19d   :  { %v523_v38 = vsub.f32 %v506_v22, %v513_v37  ;;  %v1267_v22 = vld [vmem:[#allocation8 + $0xb8] sm:$0xff]  ;;  %v1260_v37 = vld [vmem:[#allocation8 + $0x80] sm:$0xff] }
 0x19e   :  { %878 = vmatpush.bf16.msrb.mxu2 %v1267_v22 }
 0x19f   :  { %v527_v39 = vmul.f32 1.442695, %v523_v38  ;;  %v1272_v38 = vld [vmem:[#allocation8 + $0xe0] sm:$0xff] }
 0x1a1   :  { %1288 = vpow2.f32 %v527_v39  ;;  %v1271_v39 = vld [vmem:[#allocation8 + $0xd8] sm:$0xff] }
 0x1a2   :  { %879 = vmatpush.bf16.msrb.mxu2 %v1266_v24 }
 0x1a7   :  { %v1289_v40 = vpop.eup %1288 }
 0x1a8   :  { %v535_v41 = vsel %vm510_vm3, %v1289_v40, 0.0 }
 0x1a9   :  { %536 = vadd.xlane.f32.xlu0 %v535_v41  ;;  %v1270_v41 = vld [vmem:[#allocation8 + $0xd0] sm:$0xff] }
 0x1ac   :  { %v516_v42 = vpop.xlane.xlu1 %515 }
 0x1ad   :  { %v524_v43 = vsub.f32 %v507_v27, %v516_v42  ;;  %v1265_v27 = vld [vmem:[#allocation8 + $0xa8] sm:$0xff] }
 0x1ae   :  { %880 = vmatpush.bf16.msrb.mxu2 %v1265_v27  ;;  %v1269_v42 = vld [vmem:[#allocation8 + $0xc8] sm:$0xff] }
 0x1af   :  { %v529_v44 = vmul.f32 1.442695, %v524_v43 }
 0x1b1   :  { %1290 = vpow2.f32 %v529_v44 }
 0x1b2   :  { %881 = vmatpush.bf16.msrb.mxu2 %v1264_v26 }
 0x1b6   :  { %882 = vmatpush.bf16.msrb.mxu2 %v1263_v29 }
 0x1b7   :  { %v1291_v45 = vpop.eup %1290 }
 0x1b8   :  { %v538_v46 = vsel %vm510_vm3, %v1291_v45, 0.0 }
 0x1b9   :  { %539 = vadd.xlane.f32.xlu1 %v538_v46  ;;  %v519_v47 = vpop.xlane.xlu0 %518 }
 0x1ba   :  { %v525_v48 = vsub.f32 %v508_v30, %v519_v47  ;;  %v1275_v30 = vld [vmem:[#allocation8 + $0xf8] sm:$0xff]  ;;  %883 = vmatpush.bf16.msrb.mxu2 %v1262_v31 }
 0x1bb   :  { %939 = vmatpush.bf16.msrb.mxu3 %v1275_v30 }
 0x1bc   :  { %v531_v49 = vmul.f32 1.442695, %v525_v48 }
 0x1be   :  { %1292 = vpow2.f32 %v531_v49 }
 0x1bf   :  { %940 = vmatpush.bf16.msrb.mxu3 %v1274_v32 }
 0x1c3   :  { %941 = vmatpush.bf16.msrb.mxu3 %v1273_v33 }
 0x1c4   :  { %v1293_v50 = vpop.eup %1292 }
 0x1c5   :  { %v541_v51 = vsel %vm510_vm3, %v1293_v50, 0.0 }
 0x1c6   :  { %542 = vadd.xlane.f32.xlu2 %v541_v51 }
 0x1c7   :  { %942 = vmatpush.bf16.msrb.mxu3 %v1272_v38 }
 0x1c9   :  { %v522_v52 = vpop.xlane.xlu0 %521 }
 0x1ca   :  { %v526_v53 = vsub.f32 %v509_v34, %v522_v52  ;;  %v1261_v34 = vld [vmem:[#allocation8 + $0x88] sm:$0xff] }
 0x1cb   :  { %884 = vmatpush.bf16.msrb.mxu2 %v1261_v34  ;;  %943 = vmatpush.bf16.msrb.mxu3 %v1271_v39 }
 0x1cc   :  { %v533_v54 = vmul.f32 1.442695, %v526_v53 }
 0x1ce   :  { %1294 = vpow2.f32 %v533_v54 }
 0x1cf   :  { %885 = vmatpush.bf16.msrb.mxu2 %v1260_v37  ;;  %944 = vmatpush.bf16.msrb.mxu3 %v1270_v41 }
 0x1d3   :  { %945 = vmatpush.bf16.msrb.mxu3 %v1269_v42 }
 0x1d4   :  { %v1295_v55 = vpop.eup %1294 }
 0x1d5   :  { %v544_v56 = vsel %vm510_vm3, %v1295_v55, 0.0 }
 0x1d6   :  { %545 = vadd.xlane.f32.xlu2 %v544_v56 }
 0x21c   :  { %v537_v57 = vpop.xlane.xlu0 %536 }
 0x21d   :  { %1296 = vrcp.f32 %v537_v57 }
 0x223   :  { %v1297_v58 = vpop.eup %1296 }
 0x224   :  { %v551_v59 = vmul.f32 %v1297_v58, %v1289_v40 }
 0x226   :  { %v555_v60 = vpack.c.bf16 %v551_v59, %v551_v59 }
 0x228   :  { %1088 = vmatmul.msk.bf16.vlgmr.msra.gmra.mxu0 %vm510_vm3, %v555_v60 }
 0x22c   :  { %v540_v61 = vpop.xlane.xlu1 %539 }
 0x22d   :  { %1298 = vrcp.f32 %v540_v61  ;;  %v1287_v61 = vld [vmem:[%s1541_s4] ss:$0 sm:$0xff] }
 0x233   :  { %v1299_v62 = vpop.eup %1298 }
 0x234   :  { %v552_v63 = vmul.f32 %v1299_v62, %v1291_v45  ;;  %v1268_v45 = vld [vmem:[#allocation8 + $0xc0] sm:$0xff] }
 0x235   :  { %946 = vmatpush.bf16.msrb.mxu3 %v1268_v45 }
 0x236   :  { %v556_v1 = vpack.c.bf16 %v552_v63, %v552_v63 }
 0x238   :  { %1089 = vmatmul.msk.bf16.vlgmr.msra.gmra.mxu1 %vm510_vm3, %v556_v1 }
 0x239   :  { %v543_v5 = vpop.xlane.xlu2 %542 }
 0x23a   :  { %1300 = vrcp.f32 %v543_v5 }
 0x240   :  { %v1301_v9 = vpop.eup %1300 }
 0x241   :  { %v553_v10 = vmul.f32 %v1301_v9, %v1293_v50 }
 0x243   :  { %v557_v12 = vpack.c.bf16 %v553_v10, %v553_v10 }
 0x245   :  { %1090 = vmatmul.msk.bf16.vlgmr.msra.gmra.mxu2 %vm510_vm3, %v557_v12 }
 0x249   :  { %v546_v14 = vpop.xlane.xlu2 %545 }
 0x24a   :  { %1302 = vrcp.f32 %v546_v14 }
 0x250   :  { %v1303_v16 = vpop.eup %1302 }
 0x251   :  { %v554_v17 = vmul.f32 %v1303_v16, %v1295_v55 }
 0x253   :  { %v558_v18 = vpack.c.bf16 %v554_v17, %v554_v17 }
 0x255   :  { %1091 = vmatmul.msk.bf16.vlgmr.msra.gmra.mxu3 %vm510_vm3, %v558_v18 }
 0x2a5   :  { %v579_v35 = vpop.f32.mrf.mxu0 }
 0x2a6   :  { %v640_v36 = vpack.c.bf16 %v579_v35, %v579_v35 }
 0x2a8   :  { %764 = vmatmul.bf16.vlgmr.msrb.gmra.mxu0 %v640_v36 }
 0x2ad   :  { %v581_v40 = vpop.f32.mrf.mxu0 }
 0x2b5   :  { %v598_v43 = vpop.f32.mrf.mxu1 }
 0x2b6   :  { %v641_v44 = vpack.c.bf16 %v598_v43, %v598_v43 }
 0x2b8   :  { %825 = vmatmul.bf16.vlgmr.msrb.gmra.mxu1 %v641_v44 }
 0x2bd   :  { %v600_v46 = vpop.f32.mrf.mxu1 }
 0x2c8   :  { %v617_v47 = vpop.f32.mrf.mxu2 }
 0x2c9   :  { %v642_v48 = vpack.c.bf16 %v617_v47, %v617_v47 }
 0x2cb   :  { %886 = vmatmul.bf16.vlgmr.msrb.gmra.mxu2 %v642_v48 }
 0x2d0   :  { %v619_v49 = vpop.f32.mrf.mxu2 }
 0x2d8   :  { %v636_v50 = vpop.f32.mrf.mxu3 }
 0x2d9   :  { %v643_v51 = vpack.c.bf16 %v636_v50, %v636_v50 }
 0x2db   :  { %947 = vmatmul.bf16.vlgmr.msrb.gmra.mxu3 %v643_v51 }
 0x2e0   :  { %v638_v52 = vpop.f32.mrf.mxu3 }
 0x325   :  { %v765_v53 = vpop.f32.mrf.mxu0 }
 0x32d   :  { %v767_v54 = vpop.f32.mrf.mxu0 }
 0x335   :  { %v826_v55 = vpop.f32.mrf.mxu1 }
 0x336   :  { %v952_v59 = vadd.f32 %v826_v55, %v765_v53 }
 0x33d   :  { %v828_v56 = vpop.f32.mrf.mxu1 }
 0x34e   :  { %v887_v57 = vpop.f32.mrf.mxu2 }
 0x34f   :  { %v953_v60 = vadd.f32 %v952_v59, %v887_v57 }
 0x356   :  { %v889_v58 = vpop.f32.mrf.mxu2 }
 0x35e   :  { %v948_v62 = vpop.f32.mrf.mxu3 }
 0x35f   :  { %v954_v63 = vadd.f32 %v953_v60, %v948_v62 }
 0x361   :  { %v959_v0 = vadd.f32 %v1287_v61, %v954_v63 }
 0x363   :  { %960 = vst [vmem:[#allocation10] sm:$0xff] %v959_v0 }
 0x364   :  { %971 = dma.vmem_to_hbm [thread:$0]  %s967_s18, 128, %s969_s21, [#allocation4]  }
 0x366   :  { %v950_v1 = vpop.f32.mrf.mxu3 }
 0x367   :  { %1430 = dma.done.wait [#allocation4], 128  }
 0x368   :  { %1431 = vsyncadd [#allocation4], 4294967168 }
 0x369   :  { %976 = vsyncpa [#allocation3], 1 }
 0x36a   :  { %977 = vsyncpa [#allocation6], 1 }
 0x36b   :  { %978 = vsyncpa [#allocation9], 1 }
 0x36c   :  { %979 = vsyncpa [#allocation4], 1 }

</bundles_post_ra>
